<compile_context>
chip_gen: v6e
topology: v6e:2x2x1
jax: 0.10.0
libtpu: 0.0.40
codegen_flags: <defaults>
</compile_context>

<pallas_src>
import jax
import jax.numpy as jnp
from jax.experimental import pallas as pl
from jax.experimental.pallas import tpu as pltpu


MAX_TILE_ROWS = 1024  # double-buffered blocks at this tile stay well under VMEM limits


def _round_up(x, m):
    return ((x + m - 1) // m) * m


def _pick_tile(n):
    if n >= MAX_TILE_ROWS:
        return MAX_TILE_ROWS
    return _round_up(max(n, 16), 16)   # multiple of 16 -> clean bf16 (16,128) tiling


def _pad_rows(x, n_pad, axis=0):
    n = x.shape[axis]
    if n == n_pad:
        return x
    pad = [(0, 0)] * x.ndim
    pad[axis] = (0, n_pad - n)
    return jnp.pad(x, pad)


# ----------------------------------------------------------------------------
# Kernel A: fused spatial+structural descriptor stacks -> feat (N, 128) bf16
#   feat = relu( relu(x16 @ W1 + b1) @ W2 + b2 )   with block-structured W1/W2
# ----------------------------------------------------------------------------
def _feat_kernel(x_ref, w1_ref, b1_ref, w2_ref, b2_ref, o_ref):
    # x: (T, 16) f32, w1: (16, 128) f32, w2: (128, 128) bf16, biases f32
    h = jnp.dot(x_ref[...], w1_ref[...], preferred_element_type=jnp.float32)
    h = jnp.maximum(h + b1_ref[...], 0.0).astype(jnp.bfloat16)
    y = jnp.dot(h, w2_ref[...], preferred_element_type=jnp.float32)
    o_ref[...] = jnp.maximum(y + b2_ref[...], 0.0).astype(o_ref.dtype)


def feat_stack(x16, w1, b1, w2, b2, *, tile):
    n_pad, cin = x16.shape
    return pl.pallas_call(
        _feat_kernel,
        out_shape=jax.ShapeDtypeStruct((n_pad, 128), jnp.bfloat16),
        grid_spec=pltpu.PrefetchScalarGridSpec(
            num_scalar_prefetch=0,
            grid=(n_pad // tile,),
            in_specs=[
                pl.BlockSpec((tile, cin), lambda i: (i, 0)),
                pl.BlockSpec((cin, 128), lambda i: (0, 0)),
                pl.BlockSpec((1, 128), lambda i: (0, 0)),
                pl.BlockSpec((128, 128), lambda i: (0, 0)),
                pl.BlockSpec((1, 128), lambda i: (0, 0)),
            ],
            out_specs=pl.BlockSpec((tile, 128), lambda i: (i, 0)),
        ),
        compiler_params=pltpu.CompilerParams(dimension_semantics=("parallel",)),
    )(x16, w1, b1, w2, b2)


# ----------------------------------------------------------------------------
# Kernel B: fused ring blocks (x3) + fusion layer -> out (N, 256) f32
#   r_i = relu(feat @ Wri_s + pooled_i @ Wri_n + b_ri)
#   out = relu(feat @ Wf0 + r1 @ Wf1 + r2 @ Wf2 + r3 @ Wf3 + bf)
# Split-weight matmuls avoid materializing any (T, 2C)/(T, 512) concat.
# ----------------------------------------------------------------------------
def _ring_fuse_kernel(feat_ref, p1_ref, p2_ref, p3_ref, wrs_ref, wrn_ref, br_ref,
                      wf_ref, bf_ref, o_ref):
    feat = feat_ref[...]                                                   # (T,128) bf16
    pooled = (p1_ref, p2_ref, p3_ref)
    acc = jnp.dot(feat, wf_ref[0], preferred_element_type=jnp.float32)     # (T,256) f32
    for i in range(3):
        ri = jnp.dot(feat, wrs_ref[i], preferred_element_type=jnp.float32)
        ri = ri + jnp.dot(pooled[i][...], wrn_ref[i],
                          preferred_element_type=jnp.float32)
        ri = jnp.maximum(ri + br_ref[i], 0.0).astype(jnp.bfloat16)         # (T,128)
        acc = acc + jnp.dot(ri, wf_ref[i + 1], preferred_element_type=jnp.float32)
    o_ref[...] = jnp.maximum(acc + bf_ref[...], 0.0).astype(o_ref.dtype)


def ring_fuse(feat, pooled1, pooled2, pooled3,
              w_ring_self, w_ring_neigh, b_ring, w_fuse, b_fuse, *, tile):
    n_pad = feat.shape[0]
    row_spec = pl.BlockSpec((tile, 128), lambda i: (i, 0))
    return pl.pallas_call(
        _ring_fuse_kernel,
        out_shape=jax.ShapeDtypeStruct((n_pad, 256), jnp.float32),
        grid_spec=pltpu.PrefetchScalarGridSpec(
            num_scalar_prefetch=0,
            grid=(n_pad // tile,),
            in_specs=[
                row_spec,                                             # feat
                row_spec,                                             # pooled ring 1
                row_spec,                                             # pooled ring 2
                row_spec,                                             # pooled ring 3
                pl.BlockSpec((3, 128, 128), lambda i: (0, 0, 0)),     # W ring (self)
                pl.BlockSpec((3, 128, 128), lambda i: (0, 0, 0)),     # W ring (neigh)
                pl.BlockSpec((3, 1, 128), lambda i: (0, 0, 0)),       # b ring
                pl.BlockSpec((4, 128, 256), lambda i: (0, 0, 0)),     # W fuse (split)
                pl.BlockSpec((1, 256), lambda i: (0, 0)),             # b fuse
            ],
            out_specs=pl.BlockSpec((tile, 256), lambda i: (i, 0)),
        ),
        compiler_params=pltpu.CompilerParams(dimension_semantics=("parallel",)),
    )(feat, pooled1, pooled2, pooled3,
      w_ring_self, w_ring_neigh, b_ring, w_fuse, b_fuse)


# ----------------------------------------------------------------------------
# Parameter init (deterministic, synthetic)
# ----------------------------------------------------------------------------
def init_params(key):
    dims = {
        "spa1": (3, 64), "spa2": (64, 64),
        "str1": (12, 64), "str2": (64, 64),
        "ring1": (256, 128), "ring2": (256, 128), "ring3": (256, 128),
        "fuse": (512, 256),
    }
    params = {}
    for name, (cin, cout) in dims.items():
        key, kw, kb = jax.random.split(key, 3)
        scale = jnp.sqrt(2.0 / cin)
        params[name + "_w"] = jax.random.normal(kw, (cin, cout), jnp.float32) * scale
        params[name + "_b"] = jax.random.normal(kb, (1, cout), jnp.float32) * 0.1
    return params


# ----------------------------------------------------------------------------
# Encoder forward (== Network.forward: returns per-face features)
# ----------------------------------------------------------------------------
def network_forward(params, verts, faces, centers, normals, ring_1, ring_2, ring_3):
    B, F, _ = centers.shape
    N = B * F
    f32, bf16 = jnp.float32, jnp.bfloat16

    # ---- pack the two descriptor stacks into one block-structured matmul pair ----
    w1 = jnp.zeros((16, 128), f32)
    w1 = w1.at[0:3, 0:64].set(params["spa1_w"])
    w1 = w1.at[3:15, 64:128].set(params["str1_w"])
    b1 = jnp.concatenate([params["spa1_b"], params["str1_b"]], axis=-1)      # (1,128)
    w2 = jnp.zeros((128, 128), f32)
    w2 = w2.at[0:64, 0:64].set(params["spa2_w"])
    w2 = w2.at[64:128, 64:128].set(params["str2_w"])
    b2 = jnp.concatenate([params["spa2_b"], params["str2_b"]], axis=-1)      # (1,128)

    # ---- split/stack ring + fuse weights (no concats needed in-kernel) ----
    w_ring_self = jnp.stack([params["ring1_w"][:128], params["ring2_w"][:128],
                             params["ring3_w"][:128]], axis=0)               # (3,128,128)
    w_ring_neigh = jnp.stack([params["ring1_w"][128:], params["ring2_w"][128:],
                              params["ring3_w"][128:]], axis=0)              # (3,128,128)
    b_ring = jnp.stack([params["ring1_b"], params["ring2_b"],
                        params["ring3_b"]], axis=0)                          # (3,1,128)
    w_fuse = jnp.stack([params["fuse_w"][0:128], params["fuse_w"][128:256],
                        params["fuse_w"][256:384], params["fuse_w"][384:512]], axis=0)
    b_fuse = params["fuse_b"]                                                # (1,256)

    # ---- 16-channel geometric input: [centers | corner vecs | normals | 0-pad] ----
    face_verts = jax.vmap(lambda v, f: v[f])(verts, faces)                   # (B,F,3,3)
    corners = (face_verts - centers[:, :, None, :]).reshape(B, F, 9)
    x16 = jnp.concatenate(
        [centers, corners, normals, jnp.zeros((B, F, 1), f32)], axis=-1
    ).reshape(N, 16)

    tile = _pick_tile(N)
    n_pad = _round_up(N, tile)
    x16 = _pad_rows(x16, n_pad)

    # ---- Kernel A: per-face 128-wide feature ----
    feat_pad = feat_stack(x16, w1, b1, w2.astype(bf16), b2, tile=tile)       # (n_pad,128) bf16

    # ---- ring gathers + max-pool (XLA fuses gather+reduce to (N,128) per ring) ----
    feat_bfc = feat_pad[:N].reshape(B, F, 128)
    pooled = []
    for ring in (ring_1, ring_2, ring_3):
        neigh = jax.vmap(lambda f, idx: f[idx])(feat_bfc, ring)              # (B,F,K,128)
        pooled.append(_pad_rows(jnp.max(neigh, axis=2).reshape(N, 128), n_pad))

    # ---- Kernel B: ring blocks + fusion ----
    out_pad = ring_fuse(
        feat_pad, pooled[0], pooled[1], pooled[2],
        w_ring_self.astype(bf16), w_ring_neigh.astype(bf16), b_ring,
        w_fuse.astype(bf16), b_fuse, tile=tile)                              # (n_pad,256)

    return out_pad[:N].reshape(B, F, 256)


# ----------------------------------------------------------------------------
# Pure-JAX reference (mirrors the kernel's bf16-operand / f32-accum math)
# ----------------------------------------------------------------------------
def network_reference(params, verts, faces, centers, normals, ring_1, ring_2, ring_3):
    B, F, _ = centers.shape
    N = B * F
    bf16 = jnp.bfloat16

    def mm(a, b):
        return jnp.dot(a, b, preferred_element_type=jnp.float32)

    c = centers.reshape(N, 3)
    spa = jnp.maximum(mm(c, params["spa1_w"]) + params["spa1_b"], 0.0)
    spa = jnp.maximum(mm(spa.astype(bf16), params["spa2_w"].astype(bf16))
                      + params["spa2_b"], 0.0)

    face_verts = jax.vmap(lambda v, f: v[f])(verts, faces)
    corners = (face_verts - centers[:, :, None, :]).reshape(B, F, 9)
    sin = jnp.concatenate([corners, normals], axis=-1).reshape(N, 12)
    stru = jnp.maximum(mm(sin, params["str1_w"]) + params["str1_b"], 0.0)
    stru = jnp.maximum(mm(stru.astype(bf16), params["str2_w"].astype(bf16))
                       + params["str2_b"], 0.0)

    feat = jnp.concatenate([spa, stru], axis=-1).astype(bf16)                # (N,128)
    feat_bfc = feat.reshape(B, F, 128)

    ring_outs = []
    for ring, name in ((ring_1, "ring1"), (ring_2, "ring2"), (ring_3, "ring3")):
        neigh = jax.vmap(lambda f, idx: f[idx])(feat_bfc, ring)
        pooled = jnp.max(neigh, axis=2).reshape(N, 128)
        x = jnp.concatenate([feat, pooled], axis=-1)
        r = jnp.maximum(mm(x, params[name + "_w"].astype(bf16))
                        + params[name + "_b"], 0.0)
        ring_outs.append(r.astype(bf16))

    fused = jnp.concatenate([feat] + ring_outs, axis=-1)
    out = jnp.maximum(mm(fused, params["fuse_w"].astype(bf16)) + params["fuse_b"], 0.0)
    return out.reshape(B, F, 256)


# ----------------------------------------------------------------------------
# Driver
# ----------------------------------------------------------------------------
if __name__ == "__main__":
    key = jax.random.PRNGKey(0)
    B, V, F = 2, 32, 16  # small synthetic mesh: 2 meshes, 32 verts, 16 faces

    k_v, k_f, k_n, k_r1, k_r2, k_r3, k_p = jax.random.split(key, 7)

    verts = jax.random.normal(k_v, (B, V, 3), jnp.float32)
    faces = jax.random.randint(k_f, (B, F, 3), 0, V, jnp.int32)
    centers = jnp.mean(jax.vmap(lambda v, f: v[f])(verts, faces), axis=2)    # (B,F,3)
    normals = jax.random.normal(k_n, (B, F, 3), jnp.float32)
    normals = normals / (jnp.linalg.norm(normals, axis=-1, keepdims=True) + 1e-6)
    ring_1 = jax.random.randint(k_r1, (B, F, 3), 0, F, jnp.int32)
    ring_2 = jax.random.randint(k_r2, (B, F, 6), 0, F, jnp.int32)
    ring_3 = jax.random.randint(k_r3, (B, F, 12), 0, F, jnp.int32)

    params = init_params(k_p)

    fea = jax.jit(network_forward)(
        params, verts, faces, centers, normals, ring_1, ring_2, ring_3
    )
    fea = jax.block_until_ready(fea)

    ref = jax.jit(network_reference)(
        params, verts, faces, centers, normals, ring_1, ring_2, ring_3
    )
    ref = jax.block_until_ready(ref)

    assert fea.shape == (B, F, 256) and fea.dtype == jnp.float32
    assert bool(jnp.all(jnp.isfinite(fea)))
    max_err = float(jnp.max(jnp.abs(fea - ref)))
    assert bool(jnp.allclose(fea, ref, rtol=2e-2, atol=2e-2)), f"max err {max_err}"
    print("KERNEL_OK")
</pallas_src>

<mosaic_0001>
module attributes {stable_mosaic.version = 11 : i64} {
  func.func @_feat_kernel(%arg0: i32, %arg1: memref<32x16xf32, #tpu.memory_space<vmem>>, %arg2: memref<16x128xf32, #tpu.memory_space<vmem>>, %arg3: memref<1x128xf32, #tpu.memory_space<vmem>>, %arg4: memref<128x128xbf16, #tpu.memory_space<vmem>>, %arg5: memref<1x128xf32, #tpu.memory_space<vmem>>, %arg6: memref<32x128xbf16, #tpu.memory_space<vmem>>) attributes {dimension_semantics = [#tpu.dimension_semantics<parallel>], iteration_bounds = array<i64: 1>, scalar_prefetch = 0 : i64, scratch_operands = 0 : i64, tpu.core_type = #tpu.core_type<tc>, window_params = [{transform_indices = @transform_0, window_bounds = array<i64: 32, 16>}, {pipeline_mode = #tpu.pipeline_mode<synchronous>, transform_indices = @transform_1, window_bounds = array<i64: 16, 128>}, {pipeline_mode = #tpu.pipeline_mode<synchronous>, transform_indices = @transform_2, window_bounds = array<i64: 1, 128>}, {pipeline_mode = #tpu.pipeline_mode<synchronous>, transform_indices = @transform_3, window_bounds = array<i64: 128, 128>}, {pipeline_mode = #tpu.pipeline_mode<synchronous>, transform_indices = @transform_4, window_bounds = array<i64: 1, 128>}, {transform_indices = @transform_5, window_bounds = array<i64: 32, 128>}]} {
    %c0 = arith.constant 0 : index
    %c0_0 = arith.constant 0 : index
    %0 = vector.load %arg1[%c0, %c0_0] : memref<32x16xf32, #tpu.memory_space<vmem>>, vector<32x16xf32>
    %c0_1 = arith.constant 0 : index
    %c0_2 = arith.constant 0 : index
    %1 = vector.load %arg2[%c0_1, %c0_2] : memref<16x128xf32, #tpu.memory_space<vmem>>, vector<16x128xf32>
    %cst = arith.constant dense<0.000000e+00> : vector<32x128xf32>
    %2 = tpu.matmul %0, %1, %cst {dimension_numbers = #tpu.dot_dimension_numbers<[1], [0], [0], [1], [0, 0, 1, 1], [], []>} : vector<32x16xf32>, vector<16x128xf32>, vector<32x128xf32> -> vector<32x128xf32>
    %c0_3 = arith.constant 0 : index
    %c0_4 = arith.constant 0 : index
    %3 = vector.load %arg3[%c0_3, %c0_4] : memref<1x128xf32, #tpu.memory_space<vmem>>, vector<1x128xf32>
    %4 = vector.broadcast %3 : vector<1x128xf32> to vector<32x128xf32>
    %5 = arith.addf %2, %4 : vector<32x128xf32>
    %cst_5 = arith.constant 0.000000e+00 : f32
    %6 = vector.broadcast %cst_5 : f32 to vector<32x128xf32>
    %7 = arith.maximumf %5, %6 : vector<32x128xf32>
    %8 = arith.truncf %7 : vector<32x128xf32> to vector<32x128xbf16>
    %c0_6 = arith.constant 0 : index
    %c0_7 = arith.constant 0 : index
    %9 = vector.load %arg4[%c0_6, %c0_7] : memref<128x128xbf16, #tpu.memory_space<vmem>>, vector<128x128xbf16>
    %cst_8 = arith.constant dense<0.000000e+00> : vector<32x128xf32>
    %10 = tpu.matmul %8, %9, %cst_8 {dimension_numbers = #tpu.dot_dimension_numbers<[1], [0], [0], [1], [0, 0, 1, 1], [], []>} : vector<32x128xbf16>, vector<128x128xbf16>, vector<32x128xf32> -> vector<32x128xf32>
    %c0_9 = arith.constant 0 : index
    %c0_10 = arith.constant 0 : index
    %11 = vector.load %arg5[%c0_9, %c0_10] : memref<1x128xf32, #tpu.memory_space<vmem>>, vector<1x128xf32>
    %12 = vector.broadcast %11 : vector<1x128xf32> to vector<32x128xf32>
    %13 = arith.addf %10, %12 : vector<32x128xf32>
    %cst_11 = arith.constant 0.000000e+00 : f32
    %14 = vector.broadcast %cst_11 : f32 to vector<32x128xf32>
    %15 = arith.maximumf %13, %14 : vector<32x128xf32>
    %16 = arith.truncf %15 : vector<32x128xf32> to vector<32x128xbf16>
    %c0_12 = arith.constant 0 : index
    %c0_13 = arith.constant 0 : index
    %17 = vector.load %arg6[%c0_12, %c0_13] : memref<32x128xbf16, #tpu.memory_space<vmem>>, vector<32x128xbf16>
    tpu.vector_store %arg6[%c0_12, %c0_13], %16 {strides = array<i32>} : memref<32x128xbf16, #tpu.memory_space<vmem>>, vector<32x128xbf16>,
    return
  }
  func.func @transform_0(%arg0: i32) -> (i32, i32) {
    %c0_i32 = arith.constant 0 : i32
    %c0_i32_0 = arith.constant 0 : i32
    return %arg0, %c0_i32 : i32, i32
  }
  func.func @transform_1(%arg0: i32) -> (i32, i32) {
    %c0_i32 = arith.constant 0 : i32
    %c0_i32_0 = arith.constant 0 : i32
    %c0_i32_1 = arith.constant 0 : i32
    return %c0_i32, %c0_i32_0 : i32, i32
  }
  func.func @transform_2(%arg0: i32) -> (i32, i32) {
    %c0_i32 = arith.constant 0 : i32
    %c0_i32_0 = arith.constant 0 : i32
    %c0_i32_1 = arith.constant 0 : i32
    return %c0_i32, %c0_i32_0 : i32, i32
  }
  func.func @transform_3(%arg0: i32) -> (i32, i32) {
    %c0_i32 = arith.constant 0 : i32
    %c0_i32_0 = arith.constant 0 : i32
    %c0_i32_1 = arith.constant 0 : i32
    return %c0_i32, %c0_i32_0 : i32, i32
  }
  func.func @transform_4(%arg0: i32) -> (i32, i32) {
    %c0_i32 = arith.constant 0 : i32
    %c0_i32_0 = arith.constant 0 : i32
    %c0_i32_1 = arith.constant 0 : i32
    return %c0_i32, %c0_i32_0 : i32, i32
  }
  func.func @transform_5(%arg0: i32) -> (i32, i32) {
    %c0_i32 = arith.constant 0 : i32
    %c0_i32_0 = arith.constant 0 : i32
    return %arg0, %c0_i32 : i32, i32
  }
}

module attributes {stable_mosaic.version = 11 : i64} {
  func.func @_ring_fuse_kernel(%arg0: i32, %arg1: memref<32x128xbf16, #tpu.memory_space<vmem>>, %arg2: memref<32x128xbf16, #tpu.memory_space<vmem>>, %arg3: memref<32x128xbf16, #tpu.memory_space<vmem>>, %arg4: memref<32x128xbf16, #tpu.memory_space<vmem>>, %arg5: memref<3x128x128xbf16, #tpu.memory_space<vmem>>, %arg6: memref<3x128x128xbf16, #tpu.memory_space<vmem>>, %arg7: memref<3x1x128xf32, #tpu.memory_space<vmem>>, %arg8: memref<4x128x256xbf16, #tpu.memory_space<vmem>>, %arg9: memref<1x256xf32, #tpu.memory_space<vmem>>, %arg10: memref<32x256xf32, #tpu.memory_space<vmem>>) attributes {dimension_semantics = [#tpu.dimension_semantics<parallel>], iteration_bounds = array<i64: 1>, scalar_prefetch = 0 : i64, scratch_operands = 0 : i64, tpu.core_type = #tpu.core_type<tc>, window_params = [{transform_indices = @transform_0, window_bounds = array<i64: 32, 128>}, {transform_indices = @transform_1, window_bounds = array<i64: 32, 128>}, {transform_indices = @transform_2, window_bounds = array<i64: 32, 128>}, {transform_indices = @transform_3, window_bounds = array<i64: 32, 128>}, {pipeline_mode = #tpu.pipeline_mode<synchronous>, transform_indices = @transform_4, window_bounds = array<i64: 3, 128, 128>}, {pipeline_mode = #tpu.pipeline_mode<synchronous>, transform_indices = @transform_5, window_bounds = array<i64: 3, 128, 128>}, {pipeline_mode = #tpu.pipeline_mode<synchronous>, transform_indices = @transform_6, window_bounds = array<i64: 3, 1, 128>}, {pipeline_mode = #tpu.pipeline_mode<synchronous>, transform_indices = @transform_7, window_bounds = array<i64: 4, 128, 256>}, {pipeline_mode = #tpu.pipeline_mode<synchronous>, transform_indices = @transform_8, window_bounds = array<i64: 1, 256>}, {transform_indices = @transform_9, window_bounds = array<i64: 32, 256>}]} {
    %c0 = arith.constant 0 : index
    %c0_0 = arith.constant 0 : index
    %0 = vector.load %arg1[%c0, %c0_0] : memref<32x128xbf16, #tpu.memory_space<vmem>>, vector<32x128xbf16>
    %c0_1 = arith.constant 0 : index
    %c0_2 = arith.constant 0 : index
    %c0_3 = arith.constant 0 : index
    %1 = vector.load %arg8[%c0_1, %c0_2, %c0_3] : memref<4x128x256xbf16, #tpu.memory_space<vmem>>, vector<1x128x256xbf16>
    %2 = vector.shape_cast %1 : vector<1x128x256xbf16> to vector<128x256xbf16>
    %cst = arith.constant dense<0.000000e+00> : vector<32x256xf32>
    %3 = tpu.matmul %0, %2, %cst {dimension_numbers = #tpu.dot_dimension_numbers<[1], [0], [0], [1], [0, 0, 1, 1], [], []>} : vector<32x128xbf16>, vector<128x256xbf16>, vector<32x256xf32> -> vector<32x256xf32>
    %c0_4 = arith.constant 0 : index
    %c0_5 = arith.constant 0 : index
    %c0_6 = arith.constant 0 : index
    %4 = vector.load %arg5[%c0_4, %c0_5, %c0_6] : memref<3x128x128xbf16, #tpu.memory_space<vmem>>, vector<1x128x128xbf16>
    %5 = vector.shape_cast %4 : vector<1x128x128xbf16> to vector<128x128xbf16>
    %cst_7 = arith.constant dense<0.000000e+00> : vector<32x128xf32>
    %6 = tpu.matmul %0, %5, %cst_7 {dimension_numbers = #tpu.dot_dimension_numbers<[1], [0], [0], [1], [0, 0, 1, 1], [], []>} : vector<32x128xbf16>, vector<128x128xbf16>, vector<32x128xf32> -> vector<32x128xf32>
    %c0_8 = arith.constant 0 : index
    %c0_9 = arith.constant 0 : index
    %7 = vector.load %arg2[%c0_8, %c0_9] : memref<32x128xbf16, #tpu.memory_space<vmem>>, vector<32x128xbf16>
    %c0_10 = arith.constant 0 : index
    %c0_11 = arith.constant 0 : index
    %c0_12 = arith.constant 0 : index
    %8 = vector.load %arg6[%c0_10, %c0_11, %c0_12] : memref<3x128x128xbf16, #tpu.memory_space<vmem>>, vector<1x128x128xbf16>
    %9 = vector.shape_cast %8 : vector<1x128x128xbf16> to vector<128x128xbf16>
    %cst_13 = arith.constant dense<0.000000e+00> : vector<32x128xf32>
    %10 = tpu.matmul %7, %9, %cst_13 {dimension_numbers = #tpu.dot_dimension_numbers<[1], [0], [0], [1], [0, 0, 1, 1], [], []>} : vector<32x128xbf16>, vector<128x128xbf16>, vector<32x128xf32> -> vector<32x128xf32>
    %11 = arith.addf %6, %10 : vector<32x128xf32>
    %c0_14 = arith.constant 0 : index
    %c0_15 = arith.constant 0 : index
    %c0_16 = arith.constant 0 : index
    %12 = vector.load %arg7[%c0_14, %c0_15, %c0_16] : memref<3x1x128xf32, #tpu.memory_space<vmem>>, vector<1x1x128xf32>
    %13 = vector.shape_cast %12 : vector<1x1x128xf32> to vector<1x128xf32>
    %14 = vector.broadcast %13 : vector<1x128xf32> to vector<32x128xf32>
    %15 = arith.addf %11, %14 : vector<32x128xf32>
    %cst_17 = arith.constant 0.000000e+00 : f32
    %16 = vector.broadcast %cst_17 : f32 to vector<32x128xf32>
    %17 = arith.maximumf %15, %16 : vector<32x128xf32>
    %18 = arith.truncf %17 : vector<32x128xf32> to vector<32x128xbf16>
    %c1 = arith.constant 1 : index
    %c0_18 = arith.constant 0 : index
    %c0_19 = arith.constant 0 : index
    %19 = vector.load %arg8[%c1, %c0_18, %c0_19] : memref<4x128x256xbf16, #tpu.memory_space<vmem>>, vector<1x128x256xbf16>
    %20 = vector.shape_cast %19 : vector<1x128x256xbf16> to vector<128x256xbf16>
    %cst_20 = arith.constant dense<0.000000e+00> : vector<32x256xf32>
    %21 = tpu.matmul %18, %20, %cst_20 {dimension_numbers = #tpu.dot_dimension_numbers<[1], [0], [0], [1], [0, 0, 1, 1], [], []>} : vector<32x128xbf16>, vector<128x256xbf16>, vector<32x256xf32> -> vector<32x256xf32>
    %22 = arith.addf %3, %21 : vector<32x256xf32>
    %c1_21 = arith.constant 1 : index
    %c0_22 = arith.constant 0 : index
    %c0_23 = arith.constant 0 : index
    %23 = vector.load %arg5[%c1_21, %c0_22, %c0_23] : memref<3x128x128xbf16, #tpu.memory_space<vmem>>, vector<1x128x128xbf16>
    %24 = vector.shape_cast %23 : vector<1x128x128xbf16> to vector<128x128xbf16>
    %cst_24 = arith.constant dense<0.000000e+00> : vector<32x128xf32>
    %25 = tpu.matmul %0, %24, %cst_24 {dimension_numbers = #tpu.dot_dimension_numbers<[1], [0], [0], [1], [0, 0, 1, 1], [], []>} : vector<32x128xbf16>, vector<128x128xbf16>, vector<32x128xf32> -> vector<32x128xf32>
    %c0_25 = arith.constant 0 : index
    %c0_26 = arith.constant 0 : index
    %26 = vector.load %arg3[%c0_25, %c0_26] : memref<32x128xbf16, #tpu.memory_space<vmem>>, vector<32x128xbf16>
    %c1_27 = arith.constant 1 : index
    %c0_28 = arith.constant 0 : index
    %c0_29 = arith.constant 0 : index
    %27 = vector.load %arg6[%c1_27, %c0_28, %c0_29] : memref<3x128x128xbf16, #tpu.memory_space<vmem>>, vector<1x128x128xbf16>
    %28 = vector.shape_cast %27 : vector<1x128x128xbf16> to vector<128x128xbf16>
    %cst_30 = arith.constant dense<0.000000e+00> : vector<32x128xf32>
    %29 = tpu.matmul %26, %28, %cst_30 {dimension_numbers = #tpu.dot_dimension_numbers<[1], [0], [0], [1], [0, 0, 1, 1], [], []>} : vector<32x128xbf16>, vector<128x128xbf16>, vector<32x128xf32> -> vector<32x128xf32>
    %30 = arith.addf %25, %29 : vector<32x128xf32>
    %c1_31 = arith.constant 1 : index
    %c0_32 = arith.constant 0 : index
    %c0_33 = arith.constant 0 : index
    %31 = vector.load %arg7[%c1_31, %c0_32, %c0_33] : memref<3x1x128xf32, #tpu.memory_space<vmem>>, vector<1x1x128xf32>
    %32 = vector.shape_cast %31 : vector<1x1x128xf32> to vector<1x128xf32>
    %33 = vector.broadcast %32 : vector<1x128xf32> to vector<32x128xf32>
    %34 = arith.addf %30, %33 : vector<32x128xf32>
    %cst_34 = arith.constant 0.000000e+00 : f32
    %35 = vector.broadcast %cst_34 : f32 to vector<32x128xf32>
    %36 = arith.maximumf %34, %35 : vector<32x128xf32>
    %37 = arith.truncf %36 : vector<32x128xf32> to vector<32x128xbf16>
    %c2 = arith.constant 2 : index
    %c0_35 = arith.constant 0 : index
    %c0_36 = arith.constant 0 : index
    %38 = vector.load %arg8[%c2, %c0_35, %c0_36] : memref<4x128x256xbf16, #tpu.memory_space<vmem>>, vector<1x128x256xbf16>
    %39 = vector.shape_cast %38 : vector<1x128x256xbf16> to vector<128x256xbf16>
    %cst_37 = arith.constant dense<0.000000e+00> : vector<32x256xf32>
    %40 = tpu.matmul %37, %39, %cst_37 {dimension_numbers = #tpu.dot_dimension_numbers<[1], [0], [0], [1], [0, 0, 1, 1], [], []>} : vector<32x128xbf16>, vector<128x256xbf16>, vector<32x256xf32> -> vector<32x256xf32>
    %41 = arith.addf %22, %40 : vector<32x256xf32>
    %c2_38 = arith.constant 2 : index
    %c0_39 = arith.constant 0 : index
    %c0_40 = arith.constant 0 : index
    %42 = vector.load %arg5[%c2_38, %c0_39, %c0_40] : memref<3x128x128xbf16, #tpu.memory_space<vmem>>, vector<1x128x128xbf16>
    %43 = vector.shape_cast %42 : vector<1x128x128xbf16> to vector<128x128xbf16>
    %cst_41 = arith.constant dense<0.000000e+00> : vector<32x128xf32>
    %44 = tpu.matmul %0, %43, %cst_41 {dimension_numbers = #tpu.dot_dimension_numbers<[1], [0], [0], [1], [0, 0, 1, 1], [], []>} : vector<32x128xbf16>, vector<128x128xbf16>, vector<32x128xf32> -> vector<32x128xf32>
    %c0_42 = arith.constant 0 : index
    %c0_43 = arith.constant 0 : index
    %45 = vector.load %arg4[%c0_42, %c0_43] : memref<32x128xbf16, #tpu.memory_space<vmem>>, vector<32x128xbf16>
    %c2_44 = arith.constant 2 : index
    %c0_45 = arith.constant 0 : index
    %c0_46 = arith.constant 0 : index
    %46 = vector.load %arg6[%c2_44, %c0_45, %c0_46] : memref<3x128x128xbf16, #tpu.memory_space<vmem>>, vector<1x128x128xbf16>
    %47 = vector.shape_cast %46 : vector<1x128x128xbf16> to vector<128x128xbf16>
    %cst_47 = arith.constant dense<0.000000e+00> : vector<32x128xf32>
    %48 = tpu.matmul %45, %47, %cst_47 {dimension_numbers = #tpu.dot_dimension_numbers<[1], [0], [0], [1], [0, 0, 1, 1], [], []>} : vector<32x128xbf16>, vector<128x128xbf16>, vector<32x128xf32> -> vector<32x128xf32>
    %49 = arith.addf %44, %48 : vector<32x128xf32>
    %c2_48 = arith.constant 2 : index
    %c0_49 = arith.constant 0 : index
    %c0_50 = arith.constant 0 : index
    %50 = vector.load %arg7[%c2_48, %c0_49, %c0_50] : memref<3x1x128xf32, #tpu.memory_space<vmem>>, vector<1x1x128xf32>
    %51 = vector.shape_cast %50 : vector<1x1x128xf32> to vector<1x128xf32>
    %52 = vector.broadcast %51 : vector<1x128xf32> to vector<32x128xf32>
    %53 = arith.addf %49, %52 : vector<32x128xf32>
    %cst_51 = arith.constant 0.000000e+00 : f32
    %54 = vector.broadcast %cst_51 : f32 to vector<32x128xf32>
    %55 = arith.maximumf %53, %54 : vector<32x128xf32>
    %56 = arith.truncf %55 : vector<32x128xf32> to vector<32x128xbf16>
    %c3 = arith.constant 3 : index
    %c0_52 = arith.constant 0 : index
    %c0_53 = arith.constant 0 : index
    %57 = vector.load %arg8[%c3, %c0_52, %c0_53] : memref<4x128x256xbf16, #tpu.memory_space<vmem>>, vector<1x128x256xbf16>
    %58 = vector.shape_cast %57 : vector<1x128x256xbf16> to vector<128x256xbf16>
    %cst_54 = arith.constant dense<0.000000e+00> : vector<32x256xf32>
    %59 = tpu.matmul %56, %58, %cst_54 {dimension_numbers = #tpu.dot_dimension_numbers<[1], [0], [0], [1], [0, 0, 1, 1], [], []>} : vector<32x128xbf16>, vector<128x256xbf16>, vector<32x256xf32> -> vector<32x256xf32>
    %60 = arith.addf %41, %59 : vector<32x256xf32>
    %c0_55 = arith.constant 0 : index
    %c0_56 = arith.constant 0 : index
    %61 = vector.load %arg9[%c0_55, %c0_56] : memref<1x256xf32, #tpu.memory_space<vmem>>, vector<1x256xf32>
    %62 = vector.broadcast %61 : vector<1x256xf32> to vector<32x256xf32>
    %63 = arith.addf %60, %62 : vector<32x256xf32>
    %cst_57 = arith.constant 0.000000e+00 : f32
    %64 = vector.broadcast %cst_57 : f32 to vector<32x256xf32>
    %65 = arith.maximumf %63, %64 : vector<32x256xf32>
    %c0_58 = arith.constant 0 : index
    %c0_59 = arith.constant 0 : index
    %66 = vector.load %arg10[%c0_58, %c0_59] : memref<32x256xf32, #tpu.memory_space<vmem>>, vector<32x256xf32>
    tpu.vector_store %arg10[%c0_58, %c0_59], %65 {strides = array<i32>} : memref<32x256xf32, #tpu.memory_space<vmem>>, vector<32x256xf32>,
    return
  }
  func.func @transform_0(%arg0: i32) -> (i32, i32) {
    %c0_i32 = arith.constant 0 : i32
    %c0_i32_0 = arith.constant 0 : i32
    return %arg0, %c0_i32 : i32, i32
  }
  func.func @transform_1(%arg0: i32) -> (i32, i32) {
    %c0_i32 = arith.constant 0 : i32
    %c0_i32_0 = arith.constant 0 : i32
    return %arg0, %c0_i32 : i32, i32
  }
  func.func @transform_2(%arg0: i32) -> (i32, i32) {
    %c0_i32 = arith.constant 0 : i32
    %c0_i32_0 = arith.constant 0 : i32
    return %arg0, %c0_i32 : i32, i32
  }
  func.func @transform_3(%arg0: i32) -> (i32, i32) {
    %c0_i32 = arith.constant 0 : i32
    %c0_i32_0 = arith.constant 0 : i32
    return %arg0, %c0_i32 : i32, i32
  }
  func.func @transform_4(%arg0: i32) -> (i32, i32, i32) {
    %c0_i32 = arith.constant 0 : i32
    %c0_i32_0 = arith.constant 0 : i32
    %c0_i32_1 = arith.constant 0 : i32
    %c0_i32_2 = arith.constant 0 : i32
    return %c0_i32, %c0_i32_0, %c0_i32_1 : i32, i32, i32
  }
  func.func @transform_5(%arg0: i32) -> (i32, i32, i32) {
    %c0_i32 = arith.constant 0 : i32
    %c0_i32_0 = arith.constant 0 : i32
    %c0_i32_1 = arith.constant 0 : i32
    %c0_i32_2 = arith.constant 0 : i32
    return %c0_i32, %c0_i32_0, %c0_i32_1 : i32, i32, i32
  }
  func.func @transform_6(%arg0: i32) -> (i32, i32, i32) {
    %c0_i32 = arith.constant 0 : i32
    %c0_i32_0 = arith.constant 0 : i32
    %c0_i32_1 = arith.constant 0 : i32
    %c0_i32_2 = arith.constant 0 : i32
    return %c0_i32, %c0_i32_0, %c0_i32_1 : i32, i32, i32
  }
  func.func @transform_7(%arg0: i32) -> (i32, i32, i32) {
    %c0_i32 = arith.constant 0 : i32
    %c0_i32_0 = arith.constant 0 : i32
    %c0_i32_1 = arith.constant 0 : i32
    %c0_i32_2 = arith.constant 0 : i32
    return %c0_i32, %c0_i32_0, %c0_i32_1 : i32, i32, i32
  }
  func.func @transform_8(%arg0: i32) -> (i32, i32) {
    %c0_i32 = arith.constant 0 : i32
    %c0_i32_0 = arith.constant 0 : i32
    %c0_i32_1 = arith.constant 0 : i32
    return %c0_i32, %c0_i32_0 : i32, i32
  }
  func.func @transform_9(%arg0: i32) -> (i32, i32) {
    %c0_i32 = arith.constant 0 : i32
    %c0_i32_0 = arith.constant 0 : i32
    return %arg0, %c0_i32 : i32, i32
  }
}

</mosaic_0001>

<bundles_post_ra>
// kernel: network_forward.2
= control target key start
LH: loop header
LB: loop body
LE: loop exit
PB: predicated region body
PF: predicated region fallthrough
CT: control target
= control target key end

     0   :  { %vm34_vm0 = vcmask 130048   ;;  %s461_s1 = inlined_call_operand.vmem [shape: f32[16,128], index: 1, kind: input, shape index: {}]   ;;  %s462_s0 = inlined_call_operand.vmem [shape: f32[32,16], index: 0, kind: input, shape index: {}]   ;;  %s463_s3 = inlined_call_operand.vmem [shape: bf16[128,128], index: 3, kind: input, shape index: {}]   ;;  %s464_s2 = inlined_call_operand.vmem [shape: f32[1,128], index: 2, kind: input, shape index: {}]   ;;  %s465_s4 = inlined_call_operand.vmem [shape: f32[1,128], index: 4, kind: input, shape index: {}]   ;;  %s466_s5 = inlined_call_operand.vmem [shape: bf16[32,128], index: 5, kind: output, shape index: {}]  }
   0x1   :  { %v26_v0 = vld [vmem:[%s461_s1 + $0x8] sm:$0xff]  ;;  %v25_v1 = vld [vmem:[%s461_s1] sm:$0xff]  ;;  %v23_v4 = vld [vmem:[%s462_s0 + $0x10] sm:$0xff] }
   0x2   :  { %v21_v2 = vld [vmem:[%s462_s0] sm:$0xff]  ;;  %335 = vmatprep.subr.mxu0 %v26_v0  ;;  %v22_v3 = vld [vmem:[%s462_s0 + $0x8] sm:$0xff]  ;;  %v365_v5 = vld [vmem:[%s463_s3 + $0x38] sm:$0xff]  }
   0x3   :  { %339 = vmatprep.mubr.msk.f32.mxu0 %vm34_vm0, %v21_v2  ;;  %336 = vmatpush3.msra.mxu0 %v26_v0  ;;  %v366_v6 = vld [vmem:[%s463_s3 + $0x30] sm:$0xff]   ;;  %v24_v7 = vld [vmem:[%s462_s0 + $0x18] sm:$0xff]  ;;  %v367_v8 = vld [vmem:[%s463_s3 + $0x28] sm:$0xff]  }
   0x4   :  { %337 = vmatprep.subr.mxu0 %v25_v1  ;;  %345 = vmatprep.subr.bf16.mxu1 %v365_v5  ;;  %v368_v9 = vld [vmem:[%s463_s3 + $0x20] sm:$0xff]   ;;  %v369_v10 = vld [vmem:[%s463_s3 + $0x18] sm:$0xff]   ;;  %v370_v11 = vld [vmem:[%s463_s3 + $0x10] sm:$0xff]  }
   0x5   :  { %338 = vmatpush3.msra.mxu0 %v25_v1  ;;  %346 = vmatpush3.bf16.msra.mxu1 %v365_v5  ;;  %v371_v12 = vld [vmem:[%s463_s3 + $0x8] sm:$0xff]   ;;  %v372_v13 = vld [vmem:[%s463_s3] sm:$0xff]  }
   0x6   :  { %340 = vmatmul.mubr.msk.f32.vlgmr.msra.gmra.mxu0 %vm34_vm0, %v22_v3  ;;  %347 = vmatprep.subr.bf16.mxu1 %v366_v6  ;;  %v286_v14 = vld [vmem:[%s464_s2] ss:$0 sm:$0xff] }
   0x7   :  { %342 = vmatprep.mubr.msk.f32.mxu0 %vm34_vm0, %v23_v4  ;;  %v291_v30 = vld [vmem:[%s465_s4] ss:$0 sm:$0xff] }
   0x9   :  { %348 = vmatpush3.bf16.msra.mxu1 %v366_v6 }
   0xa   :  { %343 = vmatmul.mubr.msk.f32.gmra.mxu0 %vm34_vm0, %v24_v7  ;;  %349 = vmatprep.subr.bf16.mxu1 %v367_v8 }
   0xd   :  { %350 = vmatpush3.bf16.msra.mxu1 %v367_v8 }
   0xe   :  { %351 = vmatprep.subr.bf16.mxu1 %v368_v9 }
  0x11   :  { %352 = vmatpush3.bf16.msra.mxu1 %v368_v9 }
  0x12   :  { %353 = vmatprep.subr.bf16.mxu1 %v369_v10 }
  0x15   :  { %354 = vmatpush3.bf16.msra.mxu1 %v369_v10 }
  0x16   :  { %355 = vmatprep.subr.bf16.mxu1 %v370_v11 }
  0x19   :  { %356 = vmatpush3.bf16.msra.mxu1 %v370_v11 }
  0x1a   :  { %357 = vmatprep.subr.bf16.mxu1 %v371_v12 }
  0x1d   :  { %358 = vmatpush3.bf16.msra.mxu1 %v371_v12 }
  0x1e   :  { %359 = vmatprep.subr.bf16.mxu1 %v372_v13 }
  0x21   :  { %360 = vmatpush3.bf16.msra.mxu1 %v372_v13 }
  0xc6   :  { %v341_v15 = vpop.f32.mrf.mxu0 }
  0xc7   :  { %v119_v16 = vadd.f32 %v341_v15, %v286_v14 }
  0xc8   :  { %v113_v17 = vpop.f32.mrf.mxu0 }
  0xc9   :  { %v114_v18 = vadd.f32 %v286_v14, %v113_v17  ;;  %v133_v20 = vmax.f32 %v119_v16, 0.0 }
  0xca   :  { %v344_v19 = vpop.f32.mrf.mxu0 }
  0xcb   :  { %v132_v21 = vmax.f32 %v114_v18, 0.0  ;;  %v129_v22 = vadd.f32 %v344_v19, %v286_v14 }
  0xcc   :  { %v123_v23 = vpop.f32.mrf.mxu0 }
  0xcd   :  { %v124_v24 = vadd.f32 %v286_v14, %v123_v23  ;;  %v136_v25 = vpack.c.bf16 %v133_v20, %v132_v21  ;;  %v135_v26 = vmax.f32 %v129_v22, 0.0 }
  0xcf   :  { %v134_v27 = vmax.f32 %v124_v24, 0.0  ;;  %361 = vmatprep.mubr.bf16.mxu1 %v136_v25 }
  0xd1   :  { %v137_v28 = vpack.c.bf16 %v135_v26, %v134_v27 }
  0xd3   :  { %362 = vmatmul.mubr.bf16.vlgmr.msra.gmra.mxu1 %v137_v28 }
 0x193   :  { %v363_v29 = vpop.f32.mrf.mxu1 }
 0x194   :  { %v252_v32 = vadd.f32 %v363_v29, %v291_v30 }
 0x195   :  { %v243_v31 = vpop.f32.mrf.mxu1 }
 0x196   :  { %v244_v34 = vadd.f32 %v291_v30, %v243_v31  ;;  %v260_v37 = vmax.f32 %v252_v32, 0.0 }
 0x197   :  { %v364_v33 = vpop.f32.mrf.mxu1 }
 0x198   :  { %v255_v35 = vadd.f32 %v364_v33, %v291_v30  ;;  %v258_v40 = vmax.f32 %v244_v34, 0.0 }
 0x199   :  { %v246_v36 = vpop.f32.mrf.mxu1 }
 0x19a   :  { %v261_v38 = vmax.f32 %v255_v35, 0.0  ;;  %v247_v39 = vadd.f32 %v291_v30, %v246_v36 }
 0x19c   :  { %v316_v41 = vpack.c.bf16 %v261_v38, %v260_v37  ;;  %v259_v42 = vmax.f32 %v247_v39, 0.0 }
 0x19e   :  { %318 = vst [vmem:[%s466_s5 + $0x8] sm:$0xff] %v316_v41   ;;  %v311_v43 = vpack.c.bf16 %v259_v42, %v258_v40 }
 0x1a0   :  { %312 = vst [vmem:[%s466_s5] sm:$0xff] %v311_v43  }

// kernel: network_forward.3
= control target key start
LH: loop header
LB: loop body
LE: loop exit
PB: predicated region body
PF: predicated region fallthrough
CT: control target
= control target key end

     0   :  { %s2602_s0 = inlined_call_operand.vmem [shape: bf16[32,128], index: 0, kind: input, shape index: {}]   ;;  %s2603_s1 = inlined_call_operand.vmem [shape: bf16[32,128], index: 1, kind: input, shape index: {}]   ;;  %s2604_s2 = inlined_call_operand.vmem [shape: bf16[32,128], index: 2, kind: input, shape index: {}]   ;;  %s2605_s3 = inlined_call_operand.vmem [shape: bf16[32,128], index: 3, kind: input, shape index: {}]   ;;  %s2606_s4 = inlined_call_operand.vmem [shape: bf16[3,128,128], index: 4, kind: input, shape index: {}]   ;;  %s2607_s5 = inlined_call_operand.vmem [shape: bf16[3,128,128], index: 5, kind: input, shape index: {}]   ;;  %s2608_s6 = inlined_call_operand.vmem [shape: f32[3,1,128], index: 6, kind: input, shape index: {}]   ;;  %s2609_s7 = inlined_call_operand.vmem [shape: bf16[4,128,256], index: 7, kind: input, shape index: {}]   ;;  %s2610_s8 = inlined_call_operand.vmem [shape: f32[1,256], index: 8, kind: input, shape index: {}]   ;;  %s2611_s9 = inlined_call_operand.hbm [shape: f32[32,256], index: 9, kind: output, shape index: {}]  }
   0x1   :  { %v1921_v0 = vld [vmem:[%s2607_s5 + $0x38] sm:$0xff]   ;;  %v1923_v2 = vld [vmem:[%s2607_s5 + $0x30] sm:$0xff]   ;;  %v1925_v4 = vld [vmem:[%s2607_s5 + $0x28] sm:$0xff]  }
   0x2   :  { %v1922_v1 = vld [vmem:[%s2606_s4 + $0x38] sm:$0xff]   ;;  %1797 = vmatprep.subr.bf16.mxu0 %v1921_v0  ;;  %v1924_v3 = vld [vmem:[%s2606_s4 + $0x30] sm:$0xff]   ;;  %v1926_v5 = vld [vmem:[%s2606_s4 + $0x28] sm:$0xff]  }
   0x3   :  { %1817 = vmatprep.subr.bf16.mxu1 %v1922_v1  ;;  %1798 = vmatpush3.bf16.msra.mxu0 %v1921_v0  ;;  %v1927_v6 = vld [vmem:[%s2607_s5 + $0x20] sm:$0xff]   ;;  %v1929_v8 = vld [vmem:[%s2607_s5 + $0x18] sm:$0xff]   ;;  %v1931_v10 = vld [vmem:[%s2607_s5 + $0x10] sm:$0xff]  }
   0x4   :  { %1818 = vmatpush3.bf16.msra.mxu1 %v1922_v1  ;;  %1799 = vmatprep.subr.bf16.mxu0 %v1923_v2  ;;  %v1928_v7 = vld [vmem:[%s2606_s4 + $0x20] sm:$0xff]   ;;  %v1930_v9 = vld [vmem:[%s2606_s4 + $0x18] sm:$0xff]   ;;  %v1932_v11 = vld [vmem:[%s2606_s4 + $0x10] sm:$0xff]  }
   0x5   :  { %1819 = vmatprep.subr.bf16.mxu1 %v1924_v3  ;;  %v1937_v12 = vld [vmem:[%s2603_s1] sm:$0xff]   ;;  %v1933_v14 = vld [vmem:[%s2607_s5 + $0x8] sm:$0xff]   ;;  %v1949_v18 = vld [vmem:[%s2609_s7 + $0xf4] ss:$8 sps:$4 sm:$0xff]  }
   0x6   :  { %v2191_v13 = vld [vmem:[%s2602_s0] sm:$0xff]   ;;  %1813 = vmatprep.mubr.bf16.mxu0 %v1937_v12  ;;  %v1934_v15 = vld [vmem:[%s2606_s4 + $0x8] sm:$0xff]   ;;  %v1943_v19 = vld [vmem:[%s2609_s7 + $0x74] ss:$8 sps:$4 sm:$0xff]  }
   0x7   :  { %1800 = vmatpush3.bf16.msra.mxu0 %v1923_v2  ;;  %1833 = vmatprep.mubr.bf16.mxu1 %v2191_v13  ;;  %v1935_v16 = vld [vmem:[%s2607_s5] sm:$0xff]   ;;  %v1939_v20 = vld [vmem:[%s2603_s1 + $0x8] sm:$0xff]   ;;  %v1941_v22 = vld [vmem:[%s2609_s7 + $0x70] ss:$8 sps:$4 sm:$0xff]  }
   0x8   :  { %1820 = vmatpush3.bf16.msra.mxu1 %v1924_v3  ;;  %1801 = vmatprep.subr.bf16.mxu0 %v1925_v4  ;;  %v1936_v17 = vld [vmem:[%s2606_s4] sm:$0xff]   ;;  %v2218_v21 = vld [vmem:[%s2602_s0 + $0x8] sm:$0xff]   ;;  %v1947_v23 = vld [vmem:[%s2609_s7 + $0xf0] ss:$8 sps:$4 sm:$0xff]  }
   0x9   :  { %1821 = vmatprep.subr.bf16.mxu1 %v1926_v5  ;;  %v1955_v24 = vld [vmem:[%s2609_s7 + $0xe4] ss:$8 sps:$4 sm:$0xff]   ;;  %v1944_v26 = vld [vmem:[%s2609_s7 + $0x60] ss:$8 sps:$4 sm:$0xff]   ;;  %v1961_v28 = vld [vmem:[%s2609_s7 + $0xd4] ss:$8 sps:$4 sm:$0xff]  }
   0xa   :  { %v1946_v25 = vld [vmem:[%s2609_s7 + $0x64] ss:$8 sps:$4 sm:$0xff]   ;;  %v1953_v27 = vld [vmem:[%s2609_s7 + $0xe0] ss:$8 sps:$4 sm:$0xff]   ;;  %v1952_v29 = vld [vmem:[%s2609_s7 + $0x54] ss:$8 sps:$4 sm:$0xff]  }
   0xb   :  { %1802 = vmatpush3.bf16.msra.mxu0 %v1925_v4  ;;  %v1959_v30 = vld [vmem:[%s2609_s7 + $0xd0] ss:$8 sps:$4 sm:$0xff]   ;;  %v1967_v32 = vld [vmem:[%s2609_s7 + $0xc4] ss:$8 sps:$4 sm:$0xff]   ;;  %v1965_v34 = vld [vmem:[%s2609_s7 + $0xc0] ss:$8 sps:$4 sm:$0xff]  }
   0xc   :  { %1822 = vmatpush3.bf16.msra.mxu1 %v1926_v5  ;;  %1803 = vmatprep.subr.bf16.mxu0 %v1927_v6  ;;  %v1950_v31 = vld [vmem:[%s2609_s7 + $0x50] ss:$8 sps:$4 sm:$0xff]   ;;  %v1958_v33 = vld [vmem:[%s2609_s7 + $0x44] ss:$8 sps:$4 sm:$0xff]   ;;  %v1956_v35 = vld [vmem:[%s2609_s7 + $0x40] ss:$8 sps:$4 sm:$0xff]  }
   0xd   :  { %1823 = vmatprep.subr.bf16.mxu1 %v1928_v7  ;;  %v1973_v36 = vld [vmem:[%s2609_s7 + $0xb4] ss:$8 sps:$4 sm:$0xff]   ;;  %v1971_v38 = vld [vmem:[%s2609_s7 + $0xb0] ss:$8 sps:$4 sm:$0xff]   ;;  %v1970_v40 = vld [vmem:[%s2609_s7 + $0x24] ss:$8 sps:$4 sm:$0xff]  }
   0xe   :  { %v1964_v37 = vld [vmem:[%s2609_s7 + $0x34] ss:$8 sps:$4 sm:$0xff]   ;;  %v1962_v39 = vld [vmem:[%s2609_s7 + $0x30] ss:$8 sps:$4 sm:$0xff]   ;;  %v1968_v41 = vld [vmem:[%s2609_s7 + $0x20] ss:$8 sps:$4 sm:$0xff]  }
   0xf   :  { %1804 = vmatpush3.bf16.msra.mxu0 %v1927_v6 }
  0x10   :  { %1824 = vmatpush3.bf16.msra.mxu1 %v1928_v7  ;;  %1805 = vmatprep.subr.bf16.mxu0 %v1929_v8 }
  0x11   :  { %1825 = vmatprep.subr.bf16.mxu1 %v1930_v9 }
  0x13   :  { %1806 = vmatpush3.bf16.msra.mxu0 %v1929_v8 }
  0x14   :  { %1826 = vmatpush3.bf16.msra.mxu1 %v1930_v9  ;;  %1807 = vmatprep.subr.bf16.mxu0 %v1931_v10 }
  0x15   :  { %1827 = vmatprep.subr.bf16.mxu1 %v1932_v11 }
  0x17   :  { %1808 = vmatpush3.bf16.msra.mxu0 %v1931_v10 }
  0x18   :  { %1828 = vmatpush3.bf16.msra.mxu1 %v1932_v11  ;;  %1809 = vmatprep.subr.bf16.mxu0 %v1933_v14 }
  0x19   :  { %1829 = vmatprep.subr.bf16.mxu1 %v1934_v15 }
  0x1b   :  { %1810 = vmatpush3.bf16.msra.mxu0 %v1933_v14 }
  0x1c   :  { %1830 = vmatpush3.bf16.msra.mxu1 %v1934_v15  ;;  %1811 = vmatprep.subr.bf16.mxu0 %v1935_v16 }
  0x1d   :  { %1831 = vmatprep.subr.bf16.mxu1 %v1936_v17 }
  0x1f   :  { %1812 = vmatpush3.bf16.msra.mxu0 %v1935_v16 }
  0x20   :  { %1832 = vmatpush3.bf16.msra.mxu1 %v1936_v17  ;;  %422 = vmatprep.subr.bf16.mxu0 %v1949_v18 }
  0x21   :  { %555 = vmatprep.subr.bf16.mxu1 %v1943_v19 }
  0x22   :  { %1814 = vmatmul.mubr.bf16.vlgmr.msra.gmra.mxu0 %v1939_v20 }
  0x23   :  { %1834 = vmatmul.mubr.bf16.vlgmr.msra.gmra.mxu1 %v2218_v21  ;;  %423 = vmatpush1.bf16.msra.mxu0 %v1947_v23 }
  0x24   :  { %556 = vmatpush1.bf16.msra.mxu1 %v1941_v22  ;;  %424 = vmatprep.subr.bf16.mxu0 %v1955_v24 }
  0x25   :  { %557 = vmatprep.subr.bf16.mxu1 %v1946_v25 }
  0x27   :  { %425 = vmatpush1.bf16.msra.mxu0 %v1953_v27 }
  0x28   :  { %558 = vmatpush1.bf16.msra.mxu1 %v1944_v26  ;;  %426 = vmatprep.subr.bf16.mxu0 %v1961_v28 }
  0x29   :  { %559 = vmatprep.subr.bf16.mxu1 %v1952_v29 }
  0x2b   :  { %427 = vmatpush1.bf16.msra.mxu0 %v1959_v30 }
  0x2c   :  { %560 = vmatpush1.bf16.msra.mxu1 %v1950_v31  ;;  %428 = vmatprep.subr.bf16.mxu0 %v1967_v32 }
  0x2d   :  { %561 = vmatprep.subr.bf16.mxu1 %v1958_v33 }
  0x2f   :  { %429 = vmatpush1.bf16.msra.mxu0 %v1965_v34 }
  0x30   :  { %562 = vmatpush1.bf16.msra.mxu1 %v1956_v35  ;;  %430 = vmatprep.subr.bf16.mxu0 %v1973_v36 }
  0x31   :  { %563 = vmatprep.subr.bf16.mxu1 %v1964_v37 }
  0x33   :  { %431 = vmatpush1.bf16.msra.mxu0 %v1971_v38 }
  0x34   :  { %564 = vmatpush1.bf16.msra.mxu1 %v1962_v39 }
  0x35   :  { %565 = vmatprep.subr.bf16.mxu1 %v1970_v40 }
  0x38   :  { %566 = vmatpush1.bf16.msra.mxu1 %v1968_v41 }
  0x39   :  { %14 = vsyncpa [#allocation3], 0  ;;  %v1976_v42 = vld [vmem:[%s2609_s7 + $0x14] ss:$8 sps:$4 sm:$0xff]   ;;  %v1974_v43 = vld [vmem:[%s2609_s7 + $0x10] ss:$8 sps:$4 sm:$0xff]  }
  0x3a   :  { %567 = vmatprep.subr.bf16.mxu1 %v1976_v42  ;;  %v1979_v44 = vld [vmem:[%s2609_s7 + $0xa4] ss:$8 sps:$4 sm:$0xff]   ;;  %v1977_v45 = vld [vmem:[%s2609_s7 + $0xa0] ss:$8 sps:$4 sm:$0xff]   ;;  %v1985_v48 = vld [vmem:[%s2609_s7 + $0x94] ss:$8 sps:$4 sm:$0xff]  }
  0x3b   :  { %432 = vmatprep.subr.bf16.mxu0 %v1979_v44  ;;  %v1982_v46 = vld [vmem:[%s2609_s7 + $0x4] ss:$8 sps:$4 sm:$0xff]   ;;  %v1980_v47 = vld [vmem:[%s2609_s7] ss:$8 sps:$4 sm:$0xff]   ;;  %v1983_v49 = vld [vmem:[%s2609_s7 + $0x90] ss:$8 sps:$4 sm:$0xff]  }
  0x3c   :  { %568 = vmatpush1.bf16.msra.mxu1 %v1974_v43  ;;  %433 = vmatpush1.bf16.msra.mxu0 %v1977_v45  ;;  %v1986_v50 = vld [vmem:[%s2606_s4 + $0x78] sm:$0xff]   ;;  %v2095_v51 = vmov 0   ;;  %v1989_v52 = vld [vmem:[%s2609_s7 + $0x84] ss:$8 sps:$4 sm:$0xff]   ;;  %v1987_v53 = vld [vmem:[%s2609_s7 + $0x80] ss:$8 sps:$4 sm:$0xff]  }
  0x3d   :  { %569 = vmatprep.subr.bf16.mxu1 %v1982_v46  ;;  %434 = vmatprep.subr.bf16.mxu0 %v1985_v48  ;;  %v1990_v54 = vld [vmem:[%s2606_s4 + $0x70] sm:$0xff]   ;;  %v1991_v55 = vld [vmem:[%s2607_s5 + $0x78] sm:$0xff]   ;;  %v1992_v56 = vld [vmem:[%s2606_s4 + $0x68] sm:$0xff]  }
  0x3e   :  { %587 = vmatprep.mubr.bf16.mxu1 %v2095_v51  ;;  %454 = vmatprep.mubr.bf16.mxu0 %v2095_v51  ;;  %v1994_v57 = vld [vmem:[%s2606_s4 + $0x60] sm:$0xff]   ;;  %v1996_v58 = vld [vmem:[%s2606_s4 + $0x58] sm:$0xff]   ;;  %v1998_v59 = vld [vmem:[%s2606_s4 + $0x50] sm:$0xff]  }
  0x3f   :  { %v2000_v60 = vld [vmem:[%s2606_s4 + $0x48] sm:$0xff]   ;;  %v2002_v61 = vld [vmem:[%s2606_s4 + $0x40] sm:$0xff]   ;;  %v1993_v18 = vld [vmem:[%s2607_s5 + $0x70] sm:$0xff]  }
  0x40   :  { %570 = vmatpush1.bf16.msra.mxu1 %v1980_v47  ;;  %435 = vmatpush1.bf16.msra.mxu0 %v1983_v49  ;;  %v1520_v6 = vld [vmem:[%s2608_s6] ss:$0 sm:$0xff]  ;;  %v1995_v22 = vld [vmem:[%s2607_s5 + $0x68] sm:$0xff]   ;;  %v1999_v27 = vld [vmem:[%s2607_s5 + $0x58] sm:$0xff]  }
  0x41   :  { %1857 = vmatprep.subr.bf16.mxu1 %v1986_v50  ;;  %436 = vmatprep.subr.bf16.mxu0 %v1989_v52  ;;  %v2005_v24 = vld [vmem:[%s2604_s2] sm:$0xff]   ;;  %v2001_v28 = vld [vmem:[%s2607_s5 + $0x50] sm:$0xff]   ;;  %v2003_v29 = vld [vmem:[%s2607_s5 + $0x48] sm:$0xff]  }
  0x42   :  { %v1997_v26 = vld [vmem:[%s2607_s5 + $0x60] sm:$0xff]   ;;  %v2006_v31 = vld [vmem:[%s2604_s2 + $0x8] sm:$0xff]   ;;  %v2009_v32 = vld [vmem:[%s2609_s7 + $0x174] ss:$8 sps:$4 sm:$0xff]  }
  0x43   :  { %588 = vmatmul.mubr.bf16.vlgmr.msra.gmra.mxu1 %v2191_v13  ;;  %v2004_v30 = vld [vmem:[%s2607_s5 + $0x40] sm:$0xff]   ;;  %v2007_v33 = vld [vmem:[%s2609_s7 + $0x170] ss:$8 sps:$4 sm:$0xff]   ;;  %v2015_v36 = vld [vmem:[%s2609_s7 + $0x154] ss:$8 sps:$4 sm:$0xff]  }
  0x44   :  { %1858 = vmatpush3.bf16.msra.mxu1 %v1986_v50  ;;  %437 = vmatpush1.bf16.msra.mxu0 %v1987_v53  ;;  %v2010_v34 = vld [vmem:[%s2609_s7 + $0x160] ss:$8 sps:$4 sm:$0xff]   ;;  %v2012_v35 = vld [vmem:[%s2609_s7 + $0x164] ss:$8 sps:$4 sm:$0xff]   ;;  %v2013_v37 = vld [vmem:[%s2609_s7 + $0x150] ss:$8 sps:$4 sm:$0xff]  }
  0x45   :  { %597 = vmatprep.mubr.bf16.mxu1 %v2095_v51  ;;  %1859 = vmatprep.subr.bf16.mxu1 %v1990_v54  ;;  %v2018_v38 = vld [vmem:[%s2609_s7 + $0x144] ss:$8 sps:$4 sm:$0xff]   ;;  %v2016_v39 = vld [vmem:[%s2609_s7 + $0x140] ss:$8 sps:$4 sm:$0xff]   ;;  %v2021_v40 = vld [vmem:[%s2609_s7 + $0x134] ss:$8 sps:$4 sm:$0xff]  }
  0x46   :  { %1837 = vmatprep.subr.bf16.mxu0 %v1991_v55  ;;  %v2019_v41 = vld [vmem:[%s2609_s7 + $0x130] ss:$8 sps:$4 sm:$0xff]   ;;  %v2024_v42 = vld [vmem:[%s2609_s7 + $0x124] ss:$8 sps:$4 sm:$0xff]   ;;  %v2022_v43 = vld [vmem:[%s2609_s7 + $0x120] ss:$8 sps:$4 sm:$0xff]  }
  0x47   :  { %v2027_v44 = vld [vmem:[%s2609_s7 + $0x114] ss:$8 sps:$4 sm:$0xff]   ;;  %v2025_v45 = vld [vmem:[%s2609_s7 + $0x110] ss:$8 sps:$4 sm:$0xff]   ;;  %v2031_v47 = vld [vmem:[%s2609_s7 + $0x104] ss:$8 sps:$4 sm:$0xff]  }
  0x48   :  { %1860 = vmatpush3.bf16.msra.mxu1 %v1990_v54  ;;  %v2028_v46 = vld [vmem:[%s2607_s5 + $0xb8] sm:$0xff]   ;;  %v2029_v48 = vld [vmem:[%s2609_s7 + $0x100] ss:$8 sps:$4 sm:$0xff]   ;;  %v2032_v49 = vld [vmem:[%s2607_s5 + $0xb0] sm:$0xff]  }
  0x49   :  { %1861 = vmatprep.subr.bf16.mxu1 %v1992_v56  ;;  %v2434_v50 = vld [vmem:[%s2606_s4 + $0xb8] sm:$0xff]   ;;  %v2034_v52 = vld [vmem:[%s2607_s5 + $0xa8] sm:$0xff]   ;;  %v2036_v53 = vld [vmem:[%s2607_s5 + $0xa0] sm:$0xff]  }
  0x4a   :  { %v2038_v54 = vld [vmem:[%s2607_s5 + $0x98] sm:$0xff]  }
  0x4b   :  { %598 = vmatmul.mubr.bf16.gmra.mxu1 %v2218_v21 }
  0x4c   :  { %1862 = vmatpush3.bf16.msra.mxu1 %v1992_v56  ;;  %1873 = vmatprep.mubr.bf16.mxu1 %v2191_v13  ;;  %v2042_v56 = vld [vmem:[%s2607_s5 + $0x88] sm:$0xff]  }
  0x4d   :  { %1863 = vmatprep.subr.bf16.mxu1 %v1994_v57 }
  0x50   :  { %1864 = vmatpush3.bf16.msra.mxu1 %v1994_v57  ;;  %v2044_v57 = vld [vmem:[%s2607_s5 + $0x80] sm:$0xff]  }
  0x51   :  { %1865 = vmatprep.subr.bf16.mxu1 %v1996_v58 }
  0x54   :  { %1866 = vmatpush3.bf16.msra.mxu1 %v1996_v58  ;;  %v2046_v58 = vld [vmem:[%s2605_s3] sm:$0xff]  }
  0x55   :  { %1867 = vmatprep.subr.bf16.mxu1 %v1998_v59 }
  0x58   :  { %1868 = vmatpush3.bf16.msra.mxu1 %v1998_v59  ;;  %v2047_v59 = vld [vmem:[%s2605_s3 + $0x8] sm:$0xff]  }
  0x59   :  { %1869 = vmatprep.subr.bf16.mxu1 %v2000_v60 }
  0x5c   :  { %1870 = vmatpush3.bf16.msra.mxu1 %v2000_v60 }
  0x5d   :  { %1871 = vmatprep.subr.bf16.mxu1 %v2002_v61 }
  0x60   :  { %1872 = vmatpush3.bf16.msra.mxu1 %v2002_v61 }
  0x61   :  { %1877 = vmatprep.subr.bf16.mxu1 %v2028_v46 }
  0x63   :  { %1874 = vmatmul.mubr.bf16.vlgmr.msra.gmra.mxu1 %v2218_v21 }
  0x64   :  { %1878 = vmatpush3.bf16.msra.mxu1 %v2028_v46  ;;  %1893 = vmatprep.mubr.bf16.mxu1 %v2046_v58  ;;  %v2052_v46 = vld [vmem:[%s2609_s7 + $0x1e0] ss:$8 sps:$4 sm:$0xff]  }
  0x65   :  { %1879 = vmatprep.subr.bf16.mxu1 %v2032_v49  ;;  %v2070_v58 = vld [vmem:[%s2609_s7 + $0x180] ss:$8 sps:$4 sm:$0xff]  }
  0x68   :  { %1880 = vmatpush3.bf16.msra.mxu1 %v2032_v49  ;;  %v2058_v49 = vld [vmem:[%s2609_s7 + $0x1c0] ss:$8 sps:$4 sm:$0xff]  }
  0x69   :  { %1881 = vmatprep.subr.bf16.mxu1 %v2034_v52 }
  0x6c   :  { %1882 = vmatpush3.bf16.msra.mxu1 %v2034_v52  ;;  %v2061_v52 = vld [vmem:[%s2609_s7 + $0x1b0] ss:$8 sps:$4 sm:$0xff]  }
  0x6d   :  { %1883 = vmatprep.subr.bf16.mxu1 %v2036_v53 }
  0x70   :  { %1884 = vmatpush3.bf16.msra.mxu1 %v2036_v53  ;;  %v2066_v53 = vld [vmem:[%s2609_s7 + $0x1a4] ss:$8 sps:$4 sm:$0xff]  }
  0x71   :  { %1885 = vmatprep.subr.bf16.mxu1 %v2038_v54 }
  0x74   :  { %1886 = vmatpush3.bf16.msra.mxu1 %v2038_v54  ;;  %v2064_v54 = vld [vmem:[%s2609_s7 + $0x1a0] ss:$8 sps:$4 sm:$0xff]  }
  0xe2   :  { %v1815_v62 = vpop.f32.mrf.mxu0 }
  0xe3   :  { %v1835_v63 = vpop.f32.mrf.mxu1 }
  0xe4   :  { %v184_v0 = vpop.f32.mrf.mxu0  ;;  %v302_v12 = vadd.f32 %v1835_v63, %v1815_v62 }
  0xe5   :  { %v293_v1 = vpop.f32.mrf.mxu1 }
  0xe6   :  { %v294_v2 = vadd.f32 %v293_v1, %v184_v0  ;;  %v1816_v3 = vpop.f32.mrf.mxu0  ;;  %v317_v19 = vadd.f32 %v1520_v6, %v302_v12 }
  0xe7   :  { %v1836_v4 = vpop.f32.mrf.mxu1 }
  0xe8   :  { %v187_v5 = vpop.f32.mrf.mxu0  ;;  %v315_v8 = vadd.f32 %v1520_v6, %v294_v2  ;;  %v305_v10 = vadd.f32 %v1836_v4, %v1816_v3  ;;  %v321_v23 = vmax.f32 %v317_v19, 0.0 }
  0xe9   :  { %v296_v7 = vpop.f32.mrf.mxu1 }
  0xea   :  { %v297_v9 = vadd.f32 %v296_v7, %v187_v5  ;;  %v319_v14 = vmax.f32 %v315_v8, 0.0  ;;  %v318_v16 = vadd.f32 %v1520_v6, %v305_v10 }
  0xec   :  { %v316_v11 = vadd.f32 %v1520_v6, %v297_v9  ;;  %v322_v20 = vmax.f32 %v318_v16, 0.0 }
  0xee   :  { %v320_v15 = vmax.f32 %v316_v11, 0.0  ;;  %v324_v25 = vpack.c.bf16 %v322_v20, %v321_v23  ;;  %v1620_v20 = vld [vmem:[%s2608_s6 + $0x1] ss:$0 sm:$0xff] }
  0xf0   :  { %v323_v17 = vpack.c.bf16 %v320_v15, %v319_v14 }
  0xf2   :  { %455 = vmatmul.mubr.bf16.vlgmr.msra.gmra.mxu0 %v323_v17 }
  0xf3   :  { %1838 = vmatpush3.bf16.msra.mxu0 %v1991_v55  ;;  %464 = vmatprep.mubr.bf16.mxu0 %v2095_v51  ;;  %v2040_v55 = vld [vmem:[%s2607_s5 + $0x90] sm:$0xff]  }
  0xf4   :  { %1839 = vmatprep.subr.bf16.mxu0 %v1993_v18  ;;  %1887 = vmatprep.subr.bf16.mxu1 %v2040_v55 }
  0xf5   :  { %1888 = vmatpush3.bf16.msra.mxu1 %v2040_v55  ;;  %v2069_v55 = vld [vmem:[%s2609_s7 + $0x194] ss:$8 sps:$4 sm:$0xff]  }
  0xf6   :  { %1889 = vmatprep.subr.bf16.mxu1 %v2042_v56 }
  0xf7   :  { %1840 = vmatpush3.bf16.msra.mxu0 %v1993_v18 }
  0xf8   :  { %1841 = vmatprep.subr.bf16.mxu0 %v1995_v22 }
  0xf9   :  { %1890 = vmatpush3.bf16.msra.mxu1 %v2042_v56  ;;  %v2067_v56 = vld [vmem:[%s2609_s7 + $0x190] ss:$8 sps:$4 sm:$0xff]  }
  0xfa   :  { %465 = vmatmul.mubr.bf16.gmra.mxu0 %v324_v25  ;;  %1891 = vmatprep.subr.bf16.mxu1 %v2044_v57 }
  0xfb   :  { %1842 = vmatpush3.bf16.msra.mxu0 %v1995_v22  ;;  %1853 = vmatprep.mubr.bf16.mxu0 %v2005_v24 }
  0xfc   :  { %1843 = vmatprep.subr.bf16.mxu0 %v1997_v26 }
  0xfd   :  { %1892 = vmatpush3.bf16.msra.mxu1 %v2044_v57  ;;  %v2072_v57 = vld [vmem:[%s2609_s7 + $0x184] ss:$8 sps:$4 sm:$0xff]  }
  0xff   :  { %1844 = vmatpush3.bf16.msra.mxu0 %v1997_v26 }
 0x100   :  { %1845 = vmatprep.subr.bf16.mxu0 %v1999_v27  ;;  %1894 = vmatmul.mubr.bf16.vlgmr.msra.gmra.mxu1 %v2047_v59 }
 0x101   :  { %1419 = vmatprep.mubr.bf16.mxu1 %v2095_v51 }
 0x103   :  { %1846 = vmatpush3.bf16.msra.mxu0 %v1999_v27  ;;  %v2462_v60 = vpop.f32.mrf.mxu1 }
 0x104   :  { %1847 = vmatprep.subr.bf16.mxu0 %v2001_v28 }
 0x105   :  { %v2464_v61 = vpop.f32.mrf.mxu1 }
 0x107   :  { %1848 = vmatpush3.bf16.msra.mxu0 %v2001_v28  ;;  %v2468_v63 = vpop.f32.mrf.mxu1 }
 0x108   :  { %1849 = vmatprep.subr.bf16.mxu0 %v2003_v29 }
 0x109   :  { %v2472_v1 = vpop.f32.mrf.mxu1 }
 0x10b   :  { %1850 = vmatpush3.bf16.msra.mxu0 %v2003_v29  ;;  %v2476_v3 = vpop.f32.mrf.mxu1 }
 0x10c   :  { %1851 = vmatprep.subr.bf16.mxu0 %v2004_v30 }
 0x10d   :  { %v2480_v5 = vpop.f32.mrf.mxu1 }
 0x10f   :  { %1852 = vmatpush3.bf16.msra.mxu0 %v2004_v30  ;;  %v2484_v7 = vpop.f32.mrf.mxu1 }
 0x110   :  { %967 = vmatprep.subr.bf16.mxu0 %v2009_v32 }
 0x111   :  { %v2488_v9 = vpop.f32.mrf.mxu1 }
 0x112   :  { %1854 = vmatmul.mubr.bf16.vlgmr.msra.gmra.mxu0 %v2006_v31 }
 0x113   :  { %999 = vmatprep.mubr.bf16.mxu0 %v2095_v51  ;;  %968 = vmatpush1.bf16.msra.mxu0 %v2007_v33  ;;  %v2035_v33 = vld [vmem:[%s2606_s4 + $0xb0] sm:$0xff]  }
 0x114   :  { %969 = vmatprep.subr.bf16.mxu0 %v2012_v35 }
 0x117   :  { %970 = vmatpush1.bf16.msra.mxu0 %v2010_v34 }
 0x118   :  { %971 = vmatprep.subr.bf16.mxu0 %v2015_v36  ;;  %v2037_v36 = vld [vmem:[%s2606_s4 + $0xa8] sm:$0xff]  }
 0x11b   :  { %972 = vmatpush1.bf16.msra.mxu0 %v2013_v37 }
 0x11c   :  { %973 = vmatprep.subr.bf16.mxu0 %v2018_v38 }
 0x11f   :  { %974 = vmatpush1.bf16.msra.mxu0 %v2016_v39  ;;  %v2039_v39 = vld [vmem:[%s2606_s4 + $0xa0] sm:$0xff]  }
 0x120   :  { %975 = vmatprep.subr.bf16.mxu0 %v2021_v40  ;;  %v2041_v40 = vld [vmem:[%s2606_s4 + $0x98] sm:$0xff]  }
 0x123   :  { %976 = vmatpush1.bf16.msra.mxu0 %v2019_v41  ;;  %v1875_v11 = vpop.f32.mrf.mxu1  ;;  %v2043_v41 = vld [vmem:[%s2606_s4 + $0x90] sm:$0xff]  }
 0x124   :  { %977 = vmatprep.subr.bf16.mxu0 %v2024_v42  ;;  %v2045_v42 = vld [vmem:[%s2606_s4 + $0x88] sm:$0xff]  }
 0x125   :  { %v837_v14 = vpop.f32.mrf.mxu1 }
 0x127   :  { %978 = vmatpush1.bf16.msra.mxu0 %v2022_v43  ;;  %v1876_v16 = vpop.f32.mrf.mxu1  ;;  %v2051_v43 = vld [vmem:[%s2609_s7 + $0x1f4] ss:$8 sps:$4 sm:$0xff]  }
 0x128   :  { %979 = vmatprep.subr.bf16.mxu0 %v2027_v44  ;;  %v2049_v44 = vld [vmem:[%s2609_s7 + $0x1f0] ss:$8 sps:$4 sm:$0xff]   ;;  %1387 = vmatprep.subr.bf16.mxu1 %v2051_v43  ;;  %v1450_v43 = vlaneseq }
 0x129   :  { %v840_v22 = vpop.f32.mrf.mxu1  ;;  %1388 = vmatpush1.bf16.msra.mxu1 %v2049_v44 }
 0x12a   :  { %v1451_v44 = vshrl.u32 %v1450_v43, 7 }
 0x12b   :  { %980 = vmatpush1.bf16.msra.mxu0 %v2025_v45  ;;  %v2054_v45 = vld [vmem:[%s2609_s7 + $0x1e4] ss:$8 sps:$4 sm:$0xff]  }
 0x12c   :  { %981 = vmatprep.subr.bf16.mxu0 %v2031_v47  ;;  %1389 = vmatprep.subr.bf16.mxu1 %v2054_v45  ;;  %v2055_v47 = vld [vmem:[%s2609_s7 + $0x1d0] ss:$8 sps:$4 sm:$0xff]   ;;  %v1452_v45 = vsub.s32 0, %v1451_v44 }
 0x12d   :  { %1390 = vmatpush1.bf16.msra.mxu1 %v2052_v46  ;;  %v1448_v46 = vld [vmem:[%s2610_s8] sm:$0x3]  ;;  %s2096_s8 = smov [#allocation2]  }
 0x12e   :  { %s1489_s0 = sshll.u32 %s2096_s8, 4  ;;  %s1490_s0 = int_to_ptr.vmem [resolvable:$true] %s1489_s0 }
 0x12f   :  { %982 = vmatpush1.bf16.msra.mxu0 %v2029_v48  ;;  %v2060_v48 = vld [vmem:[%s2609_s7 + $0x1c4] ss:$8 sps:$4 sm:$0xff]   ;;  %s2073_s18 = scalar_lea.vmem %s1490_s0, 1024  ;;  %p2078_p1 = scmp.lt.s32.totalorder %s1490_s0, %s1490_s0 }
 0x130   :  { %1897 = vmatprep.subr.bf16.mxu0 %v2434_v50  ;;  %p2074_p0 = scmp.ne.s32.totalorder %s1490_s0, %s2073_s18  ;;  %p2079_p2 = scmp.lt.s32.totalorder %s2073_s18, %s2073_s18 }
 0x132   :  { %p2080_p3 = por %p2079_p2, %p2078_p1 }
 0x134   :  { %p2081_p4 = pnand %p2080_p3, %p2074_p0 }
 0x1b2   :  { %v2466_v62 = vpop.f32.mrf.mxu0 }
 0x1b3   :  { %v590_v59 = vadd.f32 %v2462_v60, %v2466_v62 }
 0x1b4   :  { %v2470_v0 = vpop.f32.mrf.mxu0 }
 0x1b6   :  { %v2474_v2 = vpop.f32.mrf.mxu0 }
 0x1b8   :  { %v2478_v4 = vpop.f32.mrf.mxu0 }
 0x1ba   :  { %v2482_v6 = vpop.f32.mrf.mxu0 }
 0x1bc   :  { %v2486_v8 = vpop.f32.mrf.mxu0 }
 0x1be   :  { %v2490_v10 = vpop.f32.mrf.mxu0 }
 0x1c0   :  { %v2492_v12 = vpop.f32.mrf.mxu0 }
 0x1d2   :  { %v1855_v15 = vpop.f32.mrf.mxu0 }
 0x1d3   :  { %v846_v28 = vadd.f32 %v1875_v11, %v1855_v15 }
 0x1d4   :  { %v740_v17 = vpop.f32.mrf.mxu0 }
 0x1d5   :  { %v838_v18 = vadd.f32 %v837_v14, %v740_v17  ;;  %v862_v34 = vadd.f32 %v1620_v20, %v846_v28  ;;  %v592_v14 = vadd.f32 %v2464_v61, %v2470_v0  ;;  %v594_v17 = vadd.f32 %v2468_v63, %v2474_v2 }
 0x1d6   :  { %v1856_v19 = vpop.f32.mrf.mxu0  ;;  %v602_v61 = vadd.f32 %v2480_v5, %v2486_v8  ;;  %v604_v63 = vadd.f32 %v2484_v7, %v2490_v10  ;;  %v1704_v7 = vld [vmem:[%s2608_s6 + $0x2] ss:$0 sm:$0xff] }
 0x1d7   :  { %v860_v24 = vadd.f32 %v1620_v20, %v838_v18  ;;  %v849_v26 = vadd.f32 %v1876_v16, %v1856_v19  ;;  %v866_v37 = vmax.f32 %v862_v34, 0.0 }
 0x1d8   :  { %v743_v23 = vpop.f32.mrf.mxu0 }
 0x1d9   :  { %v841_v25 = vadd.f32 %v840_v22, %v743_v23  ;;  %v864_v29 = vmax.f32 %v860_v24, 0.0  ;;  %v863_v31 = vadd.f32 %v1620_v20, %v849_v26  ;;  %v600_v24 = vadd.f32 %v2476_v3, %v2482_v6  ;;  %v1895_v3 = vpop.f32.mrf.mxu1 }
 0x1db   :  { %v861_v27 = vadd.f32 %v1620_v20, %v841_v25  ;;  %v867_v35 = vmax.f32 %v863_v31, 0.0  ;;  %v596_v20 = vadd.f32 %v2472_v1, %v2478_v4  ;;  %v606_v1 = vadd.f32 %v2488_v9, %v2492_v12  ;;  %v1160_v6 = vpop.f32.mrf.mxu1 }
 0x1dd   :  { %v865_v30 = vmax.f32 %v861_v27, 0.0  ;;  %v869_v38 = vpack.c.bf16 %v867_v35, %v866_v37 }
 0x1df   :  { %v868_v32 = vpack.c.bf16 %v865_v30, %v864_v29  ;;  %v1896_v30 = vpop.f32.mrf.mxu1 }
 0x1e1   :  { %1000 = vmatmul.mubr.bf16.vlgmr.msra.gmra.mxu0 %v868_v32  ;;  %v1163_v32 = vpop.f32.mrf.mxu1 }
 0x1e2   :  { %1898 = vmatpush3.bf16.msra.mxu0 %v2434_v50  ;;  %1009 = vmatprep.mubr.bf16.mxu0 %v2095_v51  ;;  %v2063_v50 = vld [vmem:[%s2609_s7 + $0x1b4] ss:$8 sps:$4 sm:$0xff]  }
 0x1e3   :  { %1899 = vmatprep.subr.bf16.mxu0 %v2035_v33 }
 0x1e6   :  { %1900 = vmatpush3.bf16.msra.mxu0 %v2035_v33 }
 0x1e7   :  { %1901 = vmatprep.subr.bf16.mxu0 %v2037_v36 }
 0x1e9   :  { %1010 = vmatmul.mubr.bf16.gmra.mxu0 %v869_v38 }
 0x1ea   :  { %1902 = vmatpush3.bf16.msra.mxu0 %v2037_v36  ;;  %1913 = vmatprep.mubr.bf16.mxu0 %v2191_v13  ;;  %v2048_v13 = vld [vmem:[%s2606_s4 + $0x80] sm:$0xff]  }
 0x1eb   :  { %1903 = vmatprep.subr.bf16.mxu0 %v2039_v39 }
 0x1ee   :  { %1904 = vmatpush3.bf16.msra.mxu0 %v2039_v39 }
 0x1ef   :  { %1905 = vmatprep.subr.bf16.mxu0 %v2041_v40 }
 0x1f2   :  { %1906 = vmatpush3.bf16.msra.mxu0 %v2041_v40 }
 0x1f3   :  { %1907 = vmatprep.subr.bf16.mxu0 %v2043_v41 }
 0x1f6   :  { %1908 = vmatpush3.bf16.msra.mxu0 %v2043_v41 }
 0x1f7   :  { %1909 = vmatprep.subr.bf16.mxu0 %v2045_v42 }
 0x1fa   :  { %1910 = vmatpush3.bf16.msra.mxu0 %v2045_v42 }
 0x1fb   :  { %1911 = vmatprep.subr.bf16.mxu0 %v2048_v13 }
 0x1fe   :  { %1912 = vmatpush3.bf16.msra.mxu0 %v2048_v13 }
 0x201   :  { %1914 = vmatmul.mubr.bf16.vlgmr.msra.gmra.mxu0 %v2218_v21  ;;  %v2057_v21 = vld [vmem:[%s2609_s7 + $0x1d4] ss:$8 sps:$4 sm:$0xff]  }
 0x202   :  { %1391 = vmatprep.subr.bf16.mxu1 %v2057_v21  ;;  %v1456_v21 = vsub.s32 1, %v1451_v44 }
 0x203   :  { %1392 = vmatpush1.bf16.msra.mxu1 %v2055_v47  ;;  %v1453_v47 = vrot.slane %v1448_v46, %v1452_v45 }
 0x204   :  { %1393 = vmatprep.subr.bf16.mxu1 %v2060_v48 }
 0x207   :  { %1394 = vmatpush1.bf16.msra.mxu1 %v2058_v49 }
 0x208   :  { %1395 = vmatprep.subr.bf16.mxu1 %v2063_v50  ;;  %v1457_v50 = vrot.slane %v1448_v46, %v1456_v21 }
 0x20b   :  { %1396 = vmatpush1.bf16.msra.mxu1 %v2061_v52 }
 0x20c   :  { %1397 = vmatprep.subr.bf16.mxu1 %v2066_v53 }
 0x20f   :  { %1398 = vmatpush1.bf16.msra.mxu1 %v2064_v54 }
 0x210   :  { %1399 = vmatprep.subr.bf16.mxu1 %v2069_v55 }
 0x213   :  { %1400 = vmatpush1.bf16.msra.mxu1 %v2067_v56 }
 0x214   :  { %1401 = vmatprep.subr.bf16.mxu1 %v2072_v57 }
 0x217   :  { %1402 = vmatpush1.bf16.msra.mxu1 %v2070_v58 }
 0x2a1   :  { %v1001_v11 = vpop.f32.mrf.mxu0 }
 0x2a2   :  { %v1020_v15 = vadd.f32 %v1001_v11, %v590_v59 }
 0x2a3   :  { %v1003_v16 = vpop.f32.mrf.mxu0 }
 0x2a4   :  { %v1021_v18 = vadd.f32 %v1003_v16, %v592_v14 }
 0x2a5   :  { %v1005_v19 = vpop.f32.mrf.mxu0 }
 0x2a6   :  { %v1022_v22 = vadd.f32 %v1005_v19, %v594_v17 }
 0x2a7   :  { %v1007_v23 = vpop.f32.mrf.mxu0 }
 0x2a8   :  { %v1023_v60 = vadd.f32 %v1007_v23, %v596_v20 }
 0x2a9   :  { %v1011_v62 = vpop.f32.mrf.mxu0 }
 0x2aa   :  { %v1024_v0 = vadd.f32 %v1011_v62, %v600_v24 }
 0x2ab   :  { %v1013_v25 = vpop.f32.mrf.mxu0 }
 0x2ac   :  { %v1025_v2 = vadd.f32 %v1013_v25, %v602_v61 }
 0x2ad   :  { %v1015_v26 = vpop.f32.mrf.mxu0 }
 0x2ae   :  { %v2586_v4 = vadd.f32 %v1015_v26, %v604_v63 }
 0x2af   :  { %v1017_v27 = vpop.f32.mrf.mxu0 }
 0x2b0   :  { %v2588_v28 = vadd.f32 %v1017_v27, %v606_v1 }
 0x2c1   :  { %v1915_v29 = vpop.f32.mrf.mxu0 }
 0x2c2   :  { %v1266_v35 = vadd.f32 %v1915_v29, %v1895_v3 }
 0x2c3   :  { %v1257_v5 = vpop.f32.mrf.mxu0 }
 0x2c4   :  { %v1258_v8 = vadd.f32 %v1257_v5, %v1160_v6  ;;  %v1282_v40 = vadd.f32 %v1704_v7, %v1266_v35 }
 0x2c5   :  { %v1916_v31 = vpop.f32.mrf.mxu0 }
 0x2c6   :  { %v1280_v33 = vadd.f32 %v1704_v7, %v1258_v8  ;;  %v1269_v12 = vadd.f32 %v1916_v31, %v1896_v30  ;;  %v1286_v42 = vmax.f32 %v1282_v40, 0.0 }
 0x2c7   :  { %v1260_v10 = vpop.f32.mrf.mxu0 }
 0x2c8   :  { %v1261_v9 = vadd.f32 %v1260_v10, %v1163_v32  ;;  %v1284_v36 = vmax.f32 %v1280_v33, 0.0  ;;  %v1283_v38 = vadd.f32 %v1704_v7, %v1269_v12 }
 0x2ca   :  { %v1281_v34 = vadd.f32 %v1704_v7, %v1261_v9  ;;  %v1287_v41 = vmax.f32 %v1283_v38, 0.0 }
 0x2cc   :  { %v1285_v37 = vmax.f32 %v1281_v34, 0.0  ;;  %v1289_v13 = vpack.c.bf16 %v1287_v41, %v1286_v42 }
 0x2ce   :  { %v1288_v39 = vpack.c.bf16 %v1285_v37, %v1284_v36 }
 0x2d0   :  { %1420 = vmatmul.mubr.bf16.vlgmr.msra.gmra.mxu1 %v1288_v39 }
 0x2d1   :  { %1429 = vmatprep.mubr.bf16.mxu1 %v2095_v51 }
 0x2d8   :  { %1430 = vmatmul.mubr.bf16.gmra.mxu1 %v1289_v13 }
 0x390   :  { %v1421_v48 = vpop.f32.mrf.mxu1 }
 0x391   :  { %v1440_v49 = vadd.f32 %v1421_v48, %v1020_v15 }
 0x392   :  { %v1423_v52 = vpop.f32.mrf.mxu1 }
 0x393   :  { %v1460_v53 = vadd.f32 %v1453_v47, %v1440_v49  ;;  %v1441_v54 = vadd.f32 %v1423_v52, %v1021_v18 }
 0x394   :  { %v1425_v51 = vpop.f32.mrf.mxu1 }
 0x395   :  { %v1468_v55 = vmax.f32 %v1460_v53, 0.0  ;;  %v1461_v56 = vadd.f32 %v1457_v50, %v1441_v54  ;;  %v1442_v57 = vadd.f32 %v1425_v51, %v1022_v22 }
 0x396   :  { %v1427_v58 = vpop.f32.mrf.mxu1 }
 0x397   :  { %1476 = vst [vmem:[#allocation2] sm:$0xff] %v1468_v55  ;;  %v1469_v59 = vmax.f32 %v1461_v56, 0.0  ;;  %v1462_v11 = vadd.f32 %v1453_v47, %v1442_v57  ;;  %v1443_v14 = vadd.f32 %v1427_v58, %v1023_v60 }
 0x398   :  { %v1431_v16 = vpop.f32.mrf.mxu1 }
 0x399   :  { %1477 = vst [vmem:[#allocation2 + $0x8] sm:$0xff] %v1469_v59  ;;  %v1470_v17 = vmax.f32 %v1462_v11, 0.0  ;;  %v1463_v19 = vadd.f32 %v1457_v50, %v1443_v14  ;;  %v1444_v20 = vadd.f32 %v1431_v16, %v1024_v0 }
 0x39a   :  { %v1433_v23 = vpop.f32.mrf.mxu1 }
 0x39b   :  { %1478 = vst [vmem:[#allocation2 + $0x10] sm:$0xff] %v1470_v17  ;;  %v1471_v15 = vmax.f32 %v1463_v19, 0.0  ;;  %v1464_v24 = vadd.f32 %v1453_v47, %v1444_v20  ;;  %v1445_v62 = vadd.f32 %v1433_v23, %v1025_v2 }
 0x39c   :  { %v1435_v18 = vpop.f32.mrf.mxu1 }
 0x39d   :  { %1479 = vst [vmem:[#allocation2 + $0x18] sm:$0xff] %v1471_v15  ;;  %v1472_v61 = vmax.f32 %v1464_v24, 0.0  ;;  %v1465_v25 = vadd.f32 %v1457_v50, %v1445_v62  ;;  %v1446_v22 = vadd.f32 %v1435_v18, %v2586_v4 }
 0x39e   :  { %v1437_v63 = vpop.f32.mrf.mxu1 }
 0x39f   :  { %1480 = vst [vmem:[#allocation2 + $0x20] sm:$0xff] %v1472_v61  ;;  %v1473_v26 = vmax.f32 %v1465_v25, 0.0  ;;  %v1466_v60 = vadd.f32 %v1453_v47, %v1446_v22  ;;  %v1447_v1 = vadd.f32 %v1437_v63, %v2588_v28 }
 0x3a1   :  { %1481 = vst [vmem:[#allocation2 + $0x28] sm:$0xff] %v1473_v26  ;;  %v1474_v0 = vmax.f32 %v1466_v60, 0.0  ;;  %v1467_v27 = vadd.f32 %v1457_v50, %v1447_v1 }
 0x3a3   :  { %1482 = vst [vmem:[#allocation2 + $0x30] sm:$0xff] %v1474_v0  ;;  %v1475_v2 = vmax.f32 %v1467_v27, 0.0 }
 0x3a5   :  { %1483 = vst [vmem:[#allocation2 + $0x38] sm:$0xff] %v1475_v2 }
 0x3a6   :  { %2084 = shalt.err (!%p2081_p4)
}
 0x3a7   :  { %s2097_s19 = smov 256   ;;  %s2098_s20 = smov 16  }
 0x3a8   :  { %1495 = dma.vmem_to_hbm [thread:$0]  %s1490_s0, 1024, %s2611_s9, [#allocation3], %s2097_s19, %s2097_s19, %s2098_s20  }
 0x3a9   :  { %2093 = dma.done.wait [#allocation3], 1024  }
 0x3aa   :  { %2094 = vsyncadd [#allocation3], 4294966272 }
 0x3ab   :  { %1499 = vsyncpa [#allocation3], 1 }

</bundles_post_ra>
